<compile_context>
chip_gen: v7x
topology: tpu7x:2x2x1
jax: 0.10.0
libtpu: 0.0.40
codegen_flags: <defaults>
</compile_context>

<pallas_src>
import functools

import jax
import jax.numpy as jnp
from jax.experimental import pallas as pl
from jax.experimental.pallas import tpu as pltpu


def mlp_kernel(x_ref, w1_ref, wh_ref, wu_ref, bu_ref, o_ref, *, num_hidden):
    # x arrives f32 via the block DMA; cast to bf16 in-kernel.
    x = x_ref[...].astype(jnp.bfloat16)
    # First layer: (tb, in_dim)bf16 @ (in_dim, hidden)bf16 -> f32 acc -> bf16 -> ReLU.
    h = jnp.dot(x, w1_ref[...], preferred_element_type=jnp.float32)
    h = jnp.maximum(h.astype(jnp.bfloat16), 0)  # cast-then-max == max-then-cast
    # (L-1) hidden layers: (tb, hidden) @ (hidden, hidden).
    for l in range(num_hidden):
        h = jnp.dot(h, wh_ref[l], preferred_element_type=jnp.float32)
        h = jnp.maximum(h.astype(jnp.bfloat16), 0)
    # Output layer U: (tb, hidden) @ (hidden, out_pad) + bias; f32, lane-dense.
    o_ref[...] = (
        jnp.dot(h, wu_ref[...], preferred_element_type=jnp.float32) + bu_ref[...]
    )


def prepare_params(w1, wh, wu, bu):
    """One-time prep: transpose PyTorch (out,in) weights to (in,out), cast to
    bf16 (MXU dtype), pad output layer to a lane-dense multiple of 128.
    Returns (params_dict_of_arrays, out_dim)."""
    hidden_dim, in_dim = w1.shape
    out_dim = wu.shape[0]
    out_pad = ((out_dim + 127) // 128) * 128

    w1_bf = jnp.asarray(w1).T.astype(jnp.bfloat16)  # (in_dim, hidden)
    if wh.shape[0] == 0:
        # L == 1 guard: a (0, h, h) block would fail to lower; pass one dummy
        # layer that the kernel loop (num_hidden == 0) never touches.
        wh_bf = jnp.zeros((1, hidden_dim, hidden_dim), jnp.bfloat16)
    else:
        wh_bf = jnp.transpose(jnp.asarray(wh), (0, 2, 1)).astype(jnp.bfloat16)
    wu_bf = jnp.pad(jnp.asarray(wu).T, ((0, 0), (0, out_pad - out_dim))).astype(
        jnp.bfloat16
    )  # (hidden, out_pad)
    bu_f32 = (
        jnp.pad(jnp.asarray(bu), (0, out_pad - out_dim))
        .reshape(1, out_pad)
        .astype(jnp.float32)
    )
    params = {"w1": w1_bf, "wh": wh_bf, "wu": wu_bf, "bu": bu_f32}
    return params, out_dim


def pick_tile_b(batch):
    """Single-TC chips (v5e/v6e): one big 256-row tile (grid_b == 1 for small
    batches, fewer per-step overheads, fuller MXU).  Otherwise (v7x: 2 TCs per
    chip) keep 128-row tiles so grid_b >= 2 and both cores get work."""
    try:
        kind = jax.devices()[0].device_kind.lower()
    except Exception:
        kind = ""
    single_tc = any(tag in kind for tag in ("v5e", "v5 lite", "v6e", "v6 lite"))
    if single_tc:
        return min(256, max(128, ((batch + 127) // 128) * 128))
    return 128


@functools.partial(jax.jit, static_argnames=("out_dim", "num_hidden", "tile_b"))
def net_forward(x, params, *, out_dim, num_hidden, tile_b=128):
    """x:(B,in_dim) f32; params pre-processed by prepare_params."""
    B, in_dim = x.shape
    hidden = params["w1"].shape[1]
    out_pad = params["wu"].shape[1]
    wh = params["wh"]
    wh_rows = wh.shape[0]

    # Batch tiling: cdiv grid + zero-padded tail (no silently dropped rows).
    grid_b = pl.cdiv(B, tile_b)
    b_pad = grid_b * tile_b
    if b_pad != B:
        x = jnp.pad(x, ((0, b_pad - B), (0, 0)))

    kernel = functools.partial(mlp_kernel, num_hidden=num_hidden)

    flops = 2 * b_pad * (
        in_dim * hidden + num_hidden * hidden * hidden + hidden * out_pad
    )
    bytes_accessed = (
        b_pad * in_dim * 4  # x (f32)
        + params["w1"].size * 2
        + wh.size * 2
        + params["wu"].size * 2
        + params["bu"].size * 4
        + b_pad * out_pad * 4  # out (f32)
    )

    out = pl.pallas_call(
        kernel,
        out_shape=jax.ShapeDtypeStruct((b_pad, out_pad), jnp.float32),
        grid_spec=pltpu.PrefetchScalarGridSpec(
            num_scalar_prefetch=0,
            grid=(grid_b,),
            in_specs=[
                pl.BlockSpec((tile_b, in_dim), lambda i: (i, 0)),
                pl.BlockSpec((in_dim, hidden), lambda i: (0, 0)),
                pl.BlockSpec((wh_rows, hidden, hidden), lambda i: (0, 0, 0)),
                pl.BlockSpec((hidden, out_pad), lambda i: (0, 0)),
                pl.BlockSpec((1, out_pad), lambda i: (0, 0)),
            ],
            out_specs=pl.BlockSpec((tile_b, out_pad), lambda i: (i, 0)),
        ),
        compiler_params=pltpu.CompilerParams(
            dimension_semantics=("parallel",)
        ),
        cost_estimate=pl.CostEstimate(
            flops=flops, transcendentals=0, bytes_accessed=bytes_accessed
        ),
    )(x, params["w1"], wh, params["wu"], params["bu"])

    # Strip batch-tail and lane padding.
    return out[:B, :out_dim]


def reference_forward(x, w1, wh, wu, bu):
    # Pure-JAX reference mimicking the kernel's bf16-input / f32-accum numerics,
    # taking PyTorch-oriented (out_features, in_features) weights.
    def bf(a):
        return a.astype(jnp.bfloat16).astype(jnp.float32)

    h = bf(jnp.maximum(bf(x) @ bf(w1).T, 0.0))
    for l in range(wh.shape[0]):
        h = bf(jnp.maximum(h @ bf(wh[l]).T, 0.0))
    return h @ bf(wu).T + bu[None, :]


if __name__ == "__main__":
    # Small shapes consistent with the module (in_dim, hidden_dim, out_dim, L).
    # B=200 is deliberately NOT a multiple of 128: exercises the cdiv /
    # padded-tail path (and gives a 2-step parallel grid on v7x).
    B = 200
    in_dim = 256
    hidden_dim = 128
    out_dim = 64
    L = 4  # 1 input layer + (L-1) hidden layers, then U.

    key = jax.random.PRNGKey(0)
    kx, k1, kh, ku, kb = jax.random.split(key, 5)

    x = jax.random.normal(kx, (B, in_dim), dtype=jnp.float32)

    # Deterministic PyTorch-shaped weights: Linear.weight is (out, in).
    w1 = jax.random.normal(k1, (hidden_dim, in_dim), jnp.float32) * (1.0 / in_dim ** 0.5)
    wh = jax.random.normal(kh, (L - 1, hidden_dim, hidden_dim), jnp.float32) * (
        1.0 / hidden_dim ** 0.5
    )
    wu = jax.random.normal(ku, (out_dim, hidden_dim), jnp.float32) * (
        1.0 / hidden_dim ** 0.5
    )
    bu = jax.random.normal(kb, (out_dim,), jnp.float32) * 0.01

    # One-time weight prep (transpose / bf16 cast / lane padding), then a
    # jitted forward pass over the pallas_call.
    params, out_dim_ = prepare_params(w1, wh, wu, bu)
    tile_b = pick_tile_b(B)

    out = net_forward(x, params, out_dim=out_dim_, num_hidden=L - 1, tile_b=tile_b)
    out = jax.block_until_ready(out)

    ref = reference_forward(x, w1, wh, wu, bu)
    assert out.shape == (B, out_dim)
    assert jnp.allclose(out, ref, atol=1e-2, rtol=1e-2), "mismatch vs reference"

    print("KERNEL_OK")
</pallas_src>

<mosaic_0001>
module attributes {stable_mosaic.version = 11 : i64} {
  func.func @mlp_kernel(%arg0: i32, %arg1: memref<128x256xf32, #tpu.memory_space<vmem>>, %arg2: memref<256x128xbf16, #tpu.memory_space<vmem>>, %arg3: memref<3x128x128xbf16, #tpu.memory_space<vmem>>, %arg4: memref<128x128xbf16, #tpu.memory_space<vmem>>, %arg5: memref<1x128xf32, #tpu.memory_space<vmem>>, %arg6: memref<128x128xf32, #tpu.memory_space<vmem>>) attributes {dimension_semantics = [#tpu.dimension_semantics<parallel>], iteration_bounds = array<i64: 2>, scalar_prefetch = 0 : i64, scratch_operands = 0 : i64, tpu.core_type = #tpu.core_type<tc>, window_params = [{transform_indices = @transform_0, window_bounds = array<i64: 128, 256>}, {pipeline_mode = #tpu.pipeline_mode<synchronous>, transform_indices = @transform_1, window_bounds = array<i64: 256, 128>}, {pipeline_mode = #tpu.pipeline_mode<synchronous>, transform_indices = @transform_2, window_bounds = array<i64: 3, 128, 128>}, {pipeline_mode = #tpu.pipeline_mode<synchronous>, transform_indices = @transform_3, window_bounds = array<i64: 128, 128>}, {pipeline_mode = #tpu.pipeline_mode<synchronous>, transform_indices = @transform_4, window_bounds = array<i64: 1, 128>}, {transform_indices = @transform_5, window_bounds = array<i64: 128, 128>}]} {
    %c0 = arith.constant 0 : index
    %c0_0 = arith.constant 0 : index
    %0 = vector.load %arg1[%c0, %c0_0] : memref<128x256xf32, #tpu.memory_space<vmem>>, vector<128x256xf32>
    %1 = arith.truncf %0 : vector<128x256xf32> to vector<128x256xbf16>
    %c0_1 = arith.constant 0 : index
    %c0_2 = arith.constant 0 : index
    %2 = vector.load %arg2[%c0_1, %c0_2] : memref<256x128xbf16, #tpu.memory_space<vmem>>, vector<256x128xbf16>
    %cst = arith.constant dense<0.000000e+00> : vector<128x128xf32>
    %3 = tpu.matmul %1, %2, %cst {dimension_numbers = #tpu.dot_dimension_numbers<[1], [0], [0], [1], [0, 0, 1, 1], [], []>} : vector<128x256xbf16>, vector<256x128xbf16>, vector<128x128xf32> -> vector<128x128xf32>
    %4 = arith.truncf %3 : vector<128x128xf32> to vector<128x128xbf16>
    %cst_3 = arith.constant 0.000000e+00 : bf16
    %5 = vector.broadcast %cst_3 : bf16 to vector<128x128xbf16>
    %6 = arith.maximumf %4, %5 : vector<128x128xbf16>
    %c0_4 = arith.constant 0 : index
    %c0_5 = arith.constant 0 : index
    %c0_6 = arith.constant 0 : index
    %7 = vector.load %arg3[%c0_4, %c0_5, %c0_6] : memref<3x128x128xbf16, #tpu.memory_space<vmem>>, vector<1x128x128xbf16>
    %8 = vector.shape_cast %7 : vector<1x128x128xbf16> to vector<128x128xbf16>
    %cst_7 = arith.constant dense<0.000000e+00> : vector<128x128xf32>
    %9 = tpu.matmul %6, %8, %cst_7 {dimension_numbers = #tpu.dot_dimension_numbers<[1], [0], [0], [1], [0, 0, 1, 1], [], []>} : vector<128x128xbf16>, vector<128x128xbf16>, vector<128x128xf32> -> vector<128x128xf32>
    %10 = arith.truncf %9 : vector<128x128xf32> to vector<128x128xbf16>
    %cst_8 = arith.constant 0.000000e+00 : bf16
    %11 = vector.broadcast %cst_8 : bf16 to vector<128x128xbf16>
    %12 = arith.maximumf %10, %11 : vector<128x128xbf16>
    %c1 = arith.constant 1 : index
    %c0_9 = arith.constant 0 : index
    %c0_10 = arith.constant 0 : index
    %13 = vector.load %arg3[%c1, %c0_9, %c0_10] : memref<3x128x128xbf16, #tpu.memory_space<vmem>>, vector<1x128x128xbf16>
    %14 = vector.shape_cast %13 : vector<1x128x128xbf16> to vector<128x128xbf16>
    %cst_11 = arith.constant dense<0.000000e+00> : vector<128x128xf32>
    %15 = tpu.matmul %12, %14, %cst_11 {dimension_numbers = #tpu.dot_dimension_numbers<[1], [0], [0], [1], [0, 0, 1, 1], [], []>} : vector<128x128xbf16>, vector<128x128xbf16>, vector<128x128xf32> -> vector<128x128xf32>
    %16 = arith.truncf %15 : vector<128x128xf32> to vector<128x128xbf16>
    %cst_12 = arith.constant 0.000000e+00 : bf16
    %17 = vector.broadcast %cst_12 : bf16 to vector<128x128xbf16>
    %18 = arith.maximumf %16, %17 : vector<128x128xbf16>
    %c2 = arith.constant 2 : index
    %c0_13 = arith.constant 0 : index
    %c0_14 = arith.constant 0 : index
    %19 = vector.load %arg3[%c2, %c0_13, %c0_14] : memref<3x128x128xbf16, #tpu.memory_space<vmem>>, vector<1x128x128xbf16>
    %20 = vector.shape_cast %19 : vector<1x128x128xbf16> to vector<128x128xbf16>
    %cst_15 = arith.constant dense<0.000000e+00> : vector<128x128xf32>
    %21 = tpu.matmul %18, %20, %cst_15 {dimension_numbers = #tpu.dot_dimension_numbers<[1], [0], [0], [1], [0, 0, 1, 1], [], []>} : vector<128x128xbf16>, vector<128x128xbf16>, vector<128x128xf32> -> vector<128x128xf32>
    %22 = arith.truncf %21 : vector<128x128xf32> to vector<128x128xbf16>
    %cst_16 = arith.constant 0.000000e+00 : bf16
    %23 = vector.broadcast %cst_16 : bf16 to vector<128x128xbf16>
    %24 = arith.maximumf %22, %23 : vector<128x128xbf16>
    %c0_17 = arith.constant 0 : index
    %c0_18 = arith.constant 0 : index
    %25 = vector.load %arg4[%c0_17, %c0_18] : memref<128x128xbf16, #tpu.memory_space<vmem>>, vector<128x128xbf16>
    %cst_19 = arith.constant dense<0.000000e+00> : vector<128x128xf32>
    %26 = tpu.matmul %24, %25, %cst_19 {dimension_numbers = #tpu.dot_dimension_numbers<[1], [0], [0], [1], [0, 0, 1, 1], [], []>} : vector<128x128xbf16>, vector<128x128xbf16>, vector<128x128xf32> -> vector<128x128xf32>
    %c0_20 = arith.constant 0 : index
    %c0_21 = arith.constant 0 : index
    %27 = vector.load %arg5[%c0_20, %c0_21] : memref<1x128xf32, #tpu.memory_space<vmem>>, vector<1x128xf32>
    %28 = vector.broadcast %27 : vector<1x128xf32> to vector<128x128xf32>
    %29 = arith.addf %26, %28 : vector<128x128xf32>
    %c0_22 = arith.constant 0 : index
    %c0_23 = arith.constant 0 : index
    %30 = vector.load %arg6[%c0_22, %c0_23] : memref<128x128xf32, #tpu.memory_space<vmem>>, vector<128x128xf32>
    tpu.vector_store %arg6[%c0_22, %c0_23], %29 {strides = array<i32>} : memref<128x128xf32, #tpu.memory_space<vmem>>, vector<128x128xf32>,
    return
  }
  func.func @transform_0(%arg0: i32) -> (i32, i32) {
    %c0_i32 = arith.constant 0 : i32
    %c0_i32_0 = arith.constant 0 : i32
    return %arg0, %c0_i32 : i32, i32
  }
  func.func @transform_1(%arg0: i32) -> (i32, i32) {
    %c0_i32 = arith.constant 0 : i32
    %c0_i32_0 = arith.constant 0 : i32
    %c0_i32_1 = arith.constant 0 : i32
    return %c0_i32, %c0_i32_0 : i32, i32
  }
  func.func @transform_2(%arg0: i32) -> (i32, i32, i32) {
    %c0_i32 = arith.constant 0 : i32
    %c0_i32_0 = arith.constant 0 : i32
    %c0_i32_1 = arith.constant 0 : i32
    %c0_i32_2 = arith.constant 0 : i32
    return %c0_i32, %c0_i32_0, %c0_i32_1 : i32, i32, i32
  }
  func.func @transform_3(%arg0: i32) -> (i32, i32) {
    %c0_i32 = arith.constant 0 : i32
    %c0_i32_0 = arith.constant 0 : i32
    %c0_i32_1 = arith.constant 0 : i32
    return %c0_i32, %c0_i32_0 : i32, i32
  }
  func.func @transform_4(%arg0: i32) -> (i32, i32) {
    %c0_i32 = arith.constant 0 : i32
    %c0_i32_0 = arith.constant 0 : i32
    %c0_i32_1 = arith.constant 0 : i32
    return %c0_i32, %c0_i32_0 : i32, i32
  }
  func.func @transform_5(%arg0: i32) -> (i32, i32) {
    %c0_i32 = arith.constant 0 : i32
    %c0_i32_0 = arith.constant 0 : i32
    return %arg0, %c0_i32 : i32, i32
  }
}

</mosaic_0001>

<bundles_post_ra>
// kernel: net_forward.1
= control target key start
LH: loop header
LB: loop body
LE: loop exit
PB: predicated region body
PF: predicated region fallthrough
CT: control target
= control target key end

     0   :  { %s1740_s18 = smov 0   ;;  %s1992_s0 = inlined_call_operand.vmem [shape: f32[256,256], index: 0, kind: input, shape index: {}]   ;;  %s1993_s1 = inlined_call_operand.vmem [shape: bf16[256,128], index: 1, kind: input, shape index: {}]   ;;  %s1994_s2 = inlined_call_operand.vmem [shape: bf16[3,128,128], index: 2, kind: input, shape index: {}]   ;;  %s1995_s3 = inlined_call_operand.vmem [shape: bf16[128,128], index: 3, kind: input, shape index: {}]   ;;  %s1996_s4 = inlined_call_operand.vmem [shape: f32[1,128], index: 4, kind: input, shape index: {}]   ;;  %s1997_s5 = inlined_call_operand.vmem [shape: f32[256,128], index: 5, kind: output, shape index: {}]  }
   0x1 LB: > { %s1294_s19 = sadd.s32 4294967295, %s1707_s18   ;;  %p1298_p0 = scmp.ge.s32.totalorder %s1707_s18, 1  ;;  %s1707_s18 = sphi %s1740_s18, %s15_s18  }
   0x2   : > { %p189_p1 = scmp.lt.s32.totalorder %s1707_s18, 3 }
   0x4   : > { %p190_p2 = pnand %p1298_p0, %p189_p1 }
   0x5   : > { %v1653_v0 = vld [vmem:[%s1993_s1 + $0x40] sm:$0xff] (!%p190_p2)   ;;  %s1299_s22 = sshll.u32 (!%p190_p2), %s1294_s19, 4  ;;  %v1655_v2 = vld [vmem:[%s1993_s1 + $0x48] sm:$0xff] (!%p190_p2)   ;;  %v1657_v4 = vld [vmem:[%s1993_s1 + $0x50] sm:$0xff] (!%p190_p2)  }
   0x6   : > { %193 = sbr.rel (%p190_p2) target bundleno = 1193 (0x4a9), region = 40  ;;  %v1654_v1 = vld [vmem:[%s1993_s1] sm:$0xff] (!%p190_p2)   ;;  %1388 = vmatprep.subr.bf16.mxu0 (!%p190_p2), %v1653_v0  ;;  %p219_p3 = scmp.lt.s32.totalorder (!%p190_p2), %s1299_s22, 31  ;;  %v1656_v3 = vld [vmem:[%s1993_s1 + $0x8] sm:$0xff] (!%p190_p2)   ;;  %v1658_v5 = vld [vmem:[%s1993_s1 + $0x10] sm:$0xff] (!%p190_p2)  }
   0x7   : > { %1389 = vmatpush3.bf16.msra.mxu0 (!%p190_p2), %v1654_v1  ;;  %v1659_v6 = vld [vmem:[%s1993_s1 + $0x58] sm:$0xff] (!%p190_p2)   ;;  %v1661_v8 = vld [vmem:[%s1993_s1 + $0x60] sm:$0xff] (!%p190_p2)   ;;  %v1663_v10 = vld [vmem:[%s1993_s1 + $0x68] sm:$0xff] (!%p190_p2)  }
   0x8   : > { %1390 = vmatprep.subr.bf16.mxu0 (!%p190_p2), %v1655_v2  ;;  %v1660_v7 = vld [vmem:[%s1993_s1 + $0x18] sm:$0xff] (!%p190_p2)   ;;  %v1662_v9 = vld [vmem:[%s1993_s1 + $0x20] sm:$0xff] (!%p190_p2)   ;;  %v1664_v14 = vld [vmem:[%s1993_s1 + $0x28] sm:$0xff] (!%p190_p2)  }
   0x9   : > { %v1665_v15 = vld [vmem:[%s1993_s1 + $0x70] sm:$0xff] (!%p190_p2)   ;;  %v1667_v17 = vld [vmem:[%s1993_s1 + $0x78] sm:$0xff] (!%p190_p2)   ;;  %v1669_v23 = vld [vmem:[%s1994_s2] sm:$0xff] (!%p190_p2)  }
   0xa   : > { %v1666_v16 = vld [vmem:[%s1993_s1 + $0x30] sm:$0xff] (!%p190_p2)   ;;  %v1668_v18 = vld [vmem:[%s1993_s1 + $0x38] sm:$0xff] (!%p190_p2)   ;;  %v1670_v24 = vld [vmem:[%s1994_s2 + $0x8] sm:$0xff] (!%p190_p2)   ;;  %1516 = vmatprep.subr.bf16.mxu1 (!%p190_p2), %v1669_v23 }
   0xb   : > { %1391 = vmatpush3.bf16.msra.mxu0 (!%p190_p2), %v1656_v3  ;;  %1517 = vmatpush3.bf16.msra.mxu1 (!%p190_p2), %v1669_v23  ;;  %v1671_v26 = vld [vmem:[%s1994_s2 + $0x10] sm:$0xff] (!%p190_p2)   ;;  %v1672_v30 = vld [vmem:[%s1994_s2 + $0x18] sm:$0xff] (!%p190_p2)  }
   0xc   : > { %1392 = vmatprep.subr.bf16.mxu0 (!%p190_p2), %v1657_v4  ;;  %1518 = vmatprep.subr.bf16.mxu1 (!%p190_p2), %v1670_v24  ;;  %v1673_v4 = vld [vmem:[%s1994_s2 + $0x20] sm:$0xff] (!%p190_p2)  }
   0xd   : > { %s1999_s22 = smov (!%p219_p3, %s1299_s22), 31 }
   0xe   : > { %s1387_s10 = sshll.u32 %s1999_s22, 4  ;;  %s1303_s29 = sshll.u32 %s1999_s22, 3 }
   0xf   : > { %1393 = vmatpush3.bf16.msra.mxu0 %v1658_v5  ;;  %s1781_s17 = scalar_lea.vmem %s1992_s0, %s1387_s10  ;;  %1519 = vmatpush3.bf16.msra.mxu1 %v1670_v24  ;;  %v1674_v5 = vld [vmem:[%s1994_s2 + $0x28] sm:$0xff]   ;;  %s1971_s9 = scalar_lea.vmem %s1997_s5, %s1303_s29 }
  0x10   : > { %1394 = vmatprep.subr.bf16.mxu0 %v1659_v6  ;;  %v233_v11 = vld [vmem:[%s1781_s17 + $0x8] sm:$0xff]  ;;  %v235_v12 = vld [vmem:[%s1781_s17 + $0x18] sm:$0xff]  ;;  %v232_v19 = vld [vmem:[%s1781_s17] sm:$0xff]  ;;  %1520 = vmatprep.subr.bf16.mxu1 %v1671_v26 }
  0x11   : > { %v265_v13 = vpack.c.bf16 %v235_v12, %v233_v11  ;;  %v234_v20 = vld [vmem:[%s1781_s17 + $0x10] sm:$0xff]  ;;  %v237_v21 = vld [vmem:[%s1781_s17 + $0x28] sm:$0xff]  ;;  %v239_v22 = vld [vmem:[%s1781_s17 + $0x38] sm:$0xff] }
  0x12   : > { %v264_v25 = vpack.c.bf16 %v234_v20, %v232_v19  ;;  %v267_v27 = vpack.c.bf16 %v239_v22, %v237_v21  ;;  %v236_v28 = vld [vmem:[%s1781_s17 + $0x20] sm:$0xff]  ;;  %v238_v29 = vld [vmem:[%s1781_s17 + $0x30] sm:$0xff]  ;;  %v241_v31 = vld [vmem:[%s1781_s17 + $0x48] sm:$0xff] }
  0x13   : > { %1395 = vmatpush3.bf16.msra.mxu0 %v1660_v7  ;;  %440 = vmatprep.mubr.bf16.mxu0 %v265_v13  ;;  %v243_v32 = vld [vmem:[%s1781_s17 + $0x58] sm:$0xff]  ;;  %v266_v33 = vpack.c.bf16 %v238_v29, %v236_v28  ;;  %v240_v35 = vld [vmem:[%s1781_s17 + $0x40] sm:$0xff]  ;;  %v242_v36 = vld [vmem:[%s1781_s17 + $0x50] sm:$0xff] }
  0x14   : > { %1396 = vmatprep.subr.bf16.mxu0 %v1661_v8  ;;  %1521 = vmatpush3.bf16.msra.mxu1 %v1671_v26  ;;  %v269_v34 = vpack.c.bf16 %v243_v32, %v241_v31  ;;  %v245_v37 = vld [vmem:[%s1781_s17 + $0x68] sm:$0xff]  ;;  %v247_v38 = vld [vmem:[%s1781_s17 + $0x78] sm:$0xff]  ;;  %v268_v39 = vpack.c.bf16 %v242_v36, %v240_v35  ;;  %v244_v41 = vld [vmem:[%s1781_s17 + $0x60] sm:$0xff] }
  0x15   : > { %1522 = vmatprep.subr.bf16.mxu1 %v1672_v30  ;;  %v271_v40 = vpack.c.bf16 %v247_v38, %v245_v37  ;;  %v246_v42 = vld [vmem:[%s1781_s17 + $0x70] sm:$0xff]  ;;  %v249_v43 = vld [vmem:[%s1781_s17 + $0x88] sm:$0xff]  ;;  %v251_v44 = vld [vmem:[%s1781_s17 + $0x98] sm:$0xff] }
  0x16   : > { %v270_v45 = vpack.c.bf16 %v246_v42, %v244_v41  ;;  %v273_v46 = vpack.c.bf16 %v251_v44, %v249_v43  ;;  %v248_v47 = vld [vmem:[%s1781_s17 + $0x80] sm:$0xff]  ;;  %v250_v48 = vld [vmem:[%s1781_s17 + $0x90] sm:$0xff]  ;;  %v253_v49 = vld [vmem:[%s1781_s17 + $0xa8] sm:$0xff] }
  0x17   : > { %1397 = vmatpush3.bf16.msra.mxu0 %v1662_v9  ;;  %v255_v50 = vld [vmem:[%s1781_s17 + $0xb8] sm:$0xff]  ;;  %v272_v51 = vpack.c.bf16 %v250_v48, %v248_v47  ;;  %v252_v53 = vld [vmem:[%s1781_s17 + $0xa0] sm:$0xff]  ;;  %v254_v54 = vld [vmem:[%s1781_s17 + $0xb0] sm:$0xff] }
  0x18   : > { %1398 = vmatprep.subr.bf16.mxu0 %v1663_v10  ;;  %1523 = vmatpush3.bf16.msra.mxu1 %v1672_v30  ;;  %v275_v52 = vpack.c.bf16 %v255_v50, %v253_v49  ;;  %v257_v55 = vld [vmem:[%s1781_s17 + $0xc8] sm:$0xff]  ;;  %v259_v56 = vld [vmem:[%s1781_s17 + $0xd8] sm:$0xff]  ;;  %v274_v57 = vpack.c.bf16 %v254_v54, %v252_v53  ;;  %v256_v59 = vld [vmem:[%s1781_s17 + $0xc0] sm:$0xff] }
  0x19   : > { %v277_v58 = vpack.c.bf16 %v259_v56, %v257_v55  ;;  %v258_v60 = vld [vmem:[%s1781_s17 + $0xd0] sm:$0xff]  ;;  %v261_v61 = vld [vmem:[%s1781_s17 + $0xe8] sm:$0xff]  ;;  %v263_v62 = vld [vmem:[%s1781_s17 + $0xf8] sm:$0xff]  ;;  %1524 = vmatprep.subr.bf16.mxu1 %v1673_v4 }
  0x1a   : > { %v276_v63 = vpack.c.bf16 %v258_v60, %v256_v59  ;;  %v279_v0 = vpack.c.bf16 %v263_v62, %v261_v61  ;;  %v260_v1 = vld [vmem:[%s1781_s17 + $0xe0] sm:$0xff]  ;;  %v262_v2 = vld [vmem:[%s1781_s17 + $0xf0] sm:$0xff]  ;;  %v1676_v7 = vld [vmem:[%s1994_s2 + $0x38] sm:$0xff]  }
  0x1b   : > { %1399 = vmatpush3.bf16.msra.mxu0 %v1664_v14  ;;  %v278_v3 = vpack.c.bf16 %v262_v2, %v260_v1  ;;  %v1675_v6 = vld [vmem:[%s1994_s2 + $0x30] sm:$0xff]   ;;  %v1677_v8 = vld [vmem:[%s1994_s2 + $0x40] sm:$0xff]   ;;  %v1680_v37 = vld [vmem:[%s1994_s2 + $0x58] sm:$0xff]  }
  0x1c   : > { %1400 = vmatprep.subr.bf16.mxu0 %v1665_v15  ;;  %1525 = vmatpush3.bf16.msra.mxu1 %v1673_v4  ;;  %v1681_v43 = vld [vmem:[%s1994_s2 + $0x60] sm:$0xff]   ;;  %v1682_v47 = vld [vmem:[%s1994_s2 + $0x68] sm:$0xff]  }
  0x1d   : > { %1526 = vmatprep.subr.bf16.mxu1 %v1674_v5 }
  0x1f   : > { %1401 = vmatpush3.bf16.msra.mxu0 %v1666_v16 }
  0x20   : > { %1402 = vmatprep.subr.bf16.mxu0 %v1667_v17  ;;  %1527 = vmatpush3.bf16.msra.mxu1 %v1674_v5  ;;  %v1709_v17 = vmov 0  }
  0x21   : > { %1528 = vmatprep.subr.bf16.mxu1 %v1675_v6 }
  0x23   : > { %1403 = vmatpush3.bf16.msra.mxu0 %v1668_v18 }
  0x24   : > { %1529 = vmatpush3.bf16.msra.mxu1 %v1675_v6 }
  0x25   : > { %1530 = vmatprep.subr.bf16.mxu1 %v1676_v7 }
  0x26   : > { %441 = vmatmul.mubr.bf16.vlgmr.msra.gmra.mrb[0].mxu0 %v264_v25 }
  0x27   : > { %448 = vmatprep.mubr.bf16.mxu0 %v267_v27  ;;  %v1678_v27 = vld [vmem:[%s1994_s2 + $0x48] sm:$0xff]  }
  0x28   : > { %1531 = vmatpush3.bf16.msra.mxu1 %v1676_v7 }
  0x29   : > { %1548 = vmatprep.subr.bf16.mxu1 %v1677_v8 }
  0x2e   : > { %449 = vmatmul.mubr.bf16.gmra.mrb[4].mxu0 %v266_v33  ;;  %v1679_v33 = vld [vmem:[%s1994_s2 + $0x50] sm:$0xff]  }
  0x2f   : > { %456 = vmatprep.mubr.bf16.mxu0 %v269_v34 }
  0x36   : > { %457 = vmatmul.mubr.bf16.gmra.mrb[8].mxu0 %v268_v39 }
  0x37   : > { %464 = vmatprep.mubr.bf16.mxu0 %v271_v40 }
  0x3e   : > { %465 = vmatmul.mubr.bf16.gmra.mrb[12].mxu0 %v270_v45 }
  0x3f   : > { %472 = vmatprep.mubr.bf16.mxu0 %v273_v46 }
  0x46   : > { %473 = vmatmul.mubr.bf16.gmra.mrb[16].mxu0 %v272_v51 }
  0x47   : > { %480 = vmatprep.mubr.bf16.mxu0 %v275_v52 }
  0x4e   : > { %481 = vmatmul.mubr.bf16.gmra.mrb[20].mxu0 %v274_v57 }
  0x4f   : > { %488 = vmatprep.mubr.bf16.mxu0 %v277_v58 }
  0x56   : > { %489 = vmatmul.mubr.bf16.gmra.mrb[24].mxu0 %v276_v63 }
  0x57   : > { %496 = vmatprep.mubr.bf16.mxu0 %v279_v0 }
  0x5e   : > { %497 = vmatmul.mubr.bf16.gmra.mrb[28].mxu0 %v278_v3 }
  0xf9   : > { %v1404_v9 = vpop.f32.mrb[0].mxu0 }
  0xfa   : > { %v1405_v10 = vpop.f32.mrb[1].mxu0 }
  0xfb   : > { %v1406_v11 = vadd.f32 %v1405_v10, %v1404_v9  ;;  %v1407_v12 = vpop.f32.mrb[2].mxu0 }
  0xfc   : > { %v1408_v13 = vpop.f32.mrb[3].mxu0 }
  0xfd   : > { %v1409_v14 = vadd.f32 %v1408_v13, %v1407_v12 }
  0xff   : > { %v505_v15 = vpack.c.bf16 %v1409_v14, %v1406_v11 }
 0x101   : > { %v1410_v16 = vpop.f32.mrb[4].mxu0  ;;  %v513_v18 = vmax.bf16 %v1709_v17, %v505_v15  ;;  %v1683_v15 = vld [vmem:[%s1994_s2 + $0x70] sm:$0xff]  }
 0x102   : > { %v1411_v19 = vpop.f32.mrb[5].mxu0 }
 0x103   : > { %v1412_v20 = vadd.f32 %v1411_v19, %v1410_v16  ;;  %v1413_v21 = vpop.f32.mrb[6].mxu0  ;;  %1532 = vmatprep.mubr.bf16.mxu1 %v513_v18  ;;  %v1684_v16 = vld [vmem:[%s1994_s2 + $0x78] sm:$0xff]   ;;  %v1685_v18 = vld [vmem:[%s1994_s2 + $0x80] sm:$0xff]   ;;  %v1686_v19 = vld [vmem:[%s1994_s2 + $0x88] sm:$0xff]  }
 0x104   : > { %v1414_v22 = vpop.f32.mrb[7].mxu0  ;;  %1580 = vmatprep.subr.bf16.mxu0 %v1685_v18 }
 0x105   : > { %v1415_v23 = vadd.f32 %v1414_v22, %v1413_v21  ;;  %1581 = vmatpush3.bf16.msra.mxu0 %v1685_v18  ;;  %v1688_v21 = vld [vmem:[%s1994_s2 + $0x98] sm:$0xff]   ;;  %v1689_v22 = vld [vmem:[%s1994_s2 + $0xa0] sm:$0xff]  }
 0x106   : > { %1582 = vmatprep.subr.bf16.mxu0 %v1686_v19 }
 0x107   : > { %v506_v24 = vpack.c.bf16 %v1415_v23, %v1412_v20  ;;  %v1687_v20 = vld [vmem:[%s1994_s2 + $0x90] sm:$0xff]   ;;  %v1690_v23 = vld [vmem:[%s1994_s2 + $0xa8] sm:$0xff]  }
 0x109   : > { %v1416_v25 = vpop.f32.mrb[8].mxu0  ;;  %v514_v26 = vmax.bf16 %v1709_v17, %v506_v24  ;;  %1583 = vmatpush3.bf16.msra.mxu0 %v1686_v19 }
 0x10a   : > { %v1417_v28 = vpop.f32.mrb[9].mxu0  ;;  %1584 = vmatprep.subr.bf16.mxu0 %v1687_v20 }
 0x10b   : > { %v1418_v29 = vadd.f32 %v1417_v28, %v1416_v25  ;;  %v1419_v30 = vpop.f32.mrb[10].mxu0  ;;  %1533 = vmatmul.mubr.bf16.vlgmr.msra.gmra.mrb[0].mxu1 %v514_v26 }
 0x10c   : > { %v1420_v31 = vpop.f32.mrb[11].mxu0  ;;  %1549 = vmatpush3.bf16.msra.mxu1 %v1677_v8 }
 0x10d   : > { %v1421_v32 = vadd.f32 %v1420_v31, %v1419_v30  ;;  %1550 = vmatprep.subr.bf16.mxu1 %v1678_v27  ;;  %1585 = vmatpush3.bf16.msra.mxu0 %v1687_v20 }
 0x10e   : > { %1586 = vmatprep.subr.bf16.mxu0 %v1688_v21 }
 0x10f   : > { %v507_v34 = vpack.c.bf16 %v1421_v32, %v1418_v29 }
 0x110   : > { %1551 = vmatpush3.bf16.msra.mxu1 %v1678_v27 }
 0x111   : > { %v1422_v35 = vpop.f32.mrb[12].mxu0  ;;  %v515_v36 = vmax.bf16 %v1709_v17, %v507_v34  ;;  %1552 = vmatprep.subr.bf16.mxu1 %v1679_v33  ;;  %1587 = vmatpush3.bf16.msra.mxu0 %v1688_v21 }
 0x112   : > { %v1423_v38 = vpop.f32.mrb[13].mxu0  ;;  %1588 = vmatprep.subr.bf16.mxu0 %v1689_v22 }
 0x113   : > { %v1424_v39 = vadd.f32 %v1423_v38, %v1422_v35  ;;  %v1425_v40 = vpop.f32.mrb[14].mxu0  ;;  %1536 = vmatprep.mubr.bf16.mxu1 %v515_v36 }
 0x114   : > { %v1426_v41 = vpop.f32.mrb[15].mxu0  ;;  %1553 = vmatpush3.bf16.msra.mxu1 %v1679_v33 }
 0x115   : > { %v1427_v42 = vadd.f32 %v1426_v41, %v1425_v40  ;;  %1554 = vmatprep.subr.bf16.mxu1 %v1680_v37  ;;  %1589 = vmatpush3.bf16.msra.mxu0 %v1689_v22 }
 0x116   : > { %1590 = vmatprep.subr.bf16.mxu0 %v1690_v23 }
 0x117   : > { %v508_v44 = vpack.c.bf16 %v1427_v42, %v1424_v39 }
 0x118   : > { %1555 = vmatpush3.bf16.msra.mxu1 %v1680_v37 }
 0x119   : > { %v1428_v45 = vpop.f32.mrb[16].mxu0  ;;  %v516_v46 = vmax.bf16 %v1709_v17, %v508_v44  ;;  %1556 = vmatprep.subr.bf16.mxu1 %v1681_v43  ;;  %1591 = vmatpush3.bf16.msra.mxu0 %v1690_v23 }
 0x11a   : > { %v1429_v48 = vpop.f32.mrb[17].mxu0 }
 0x11b   : > { %v1430_v49 = vadd.f32 %v1429_v48, %v1428_v45  ;;  %v1431_v50 = vpop.f32.mrb[18].mxu0  ;;  %1537 = vmatmul.mubr.bf16.gmra.mrb[4].mxu1 %v516_v46 }
 0x11c   : > { %v1432_v51 = vpop.f32.mrb[19].mxu0  ;;  %1557 = vmatpush3.bf16.msra.mxu1 %v1681_v43 }
 0x11d   : > { %v1433_v52 = vadd.f32 %v1432_v51, %v1431_v50  ;;  %1558 = vmatprep.subr.bf16.mxu1 %v1682_v47 }
 0x11f   : > { %v509_v53 = vpack.c.bf16 %v1433_v52, %v1430_v49 }
 0x120   : > { %1559 = vmatpush3.bf16.msra.mxu1 %v1682_v47 }
 0x121   : > { %v1434_v54 = vpop.f32.mrb[20].mxu0  ;;  %v517_v55 = vmax.bf16 %v1709_v17, %v509_v53  ;;  %1560 = vmatprep.subr.bf16.mxu1 %v1683_v15 }
 0x122   : > { %v1435_v56 = vpop.f32.mrb[21].mxu0 }
 0x123   : > { %v1436_v57 = vadd.f32 %v1435_v56, %v1434_v54  ;;  %v1437_v58 = vpop.f32.mrb[22].mxu0  ;;  %1540 = vmatprep.mubr.bf16.mxu1 %v517_v55  ;;  %v1691_v56 = vld [vmem:[%s1994_s2 + $0xb0] sm:$0xff]  }
 0x124   : > { %v1438_v59 = vpop.f32.mrb[23].mxu0  ;;  %1561 = vmatpush3.bf16.msra.mxu1 %v1683_v15  ;;  %1592 = vmatprep.subr.bf16.mxu0 %v1691_v56 }
 0x125   : > { %v1439_v60 = vadd.f32 %v1438_v59, %v1437_v58  ;;  %1562 = vmatprep.subr.bf16.mxu1 %v1684_v16  ;;  %1593 = vmatpush3.bf16.msra.mxu0 %v1691_v56  ;;  %v1693_v58 = vld [vmem:[%s1995_s3] sm:$0xff]   ;;  %v1694_v59 = vld [vmem:[%s1995_s3 + $0x8] sm:$0xff]  }
 0x127   : > { %v510_v61 = vpack.c.bf16 %v1439_v60, %v1436_v57  ;;  %v1692_v57 = vld [vmem:[%s1994_s2 + $0xb8] sm:$0xff]   ;;  %v1695_v60 = vld [vmem:[%s1995_s3 + $0x10] sm:$0xff]  }
 0x128   : > { %1563 = vmatpush3.bf16.msra.mxu1 %v1684_v16  ;;  %1594 = vmatprep.subr.bf16.mxu0 %v1692_v57 }
 0x129   : > { %v1440_v62 = vpop.f32.mrb[24].mxu0  ;;  %v518_v63 = vmax.bf16 %v1709_v17, %v510_v61  ;;  %1595 = vmatpush3.bf16.msra.mxu0 %v1692_v57  ;;  %1612 = vmatprep.subr.bf16.mxu1 %v1693_v58  ;;  %v1696_v61 = vld [vmem:[%s1995_s3 + $0x18] sm:$0xff]  }
 0x12a   : > { %v1441_v0 = vpop.f32.mrb[25].mxu0 }
 0x12b   : > { %v1442_v1 = vadd.f32 %v1441_v0, %v1440_v62  ;;  %v1443_v2 = vpop.f32.mrb[26].mxu0  ;;  %1541 = vmatmul.mubr.bf16.gmra.mrb[8].mxu1 %v518_v63  ;;  %v1697_v62 = vld [vmem:[%s1995_s3 + $0x20] sm:$0xff]   ;;  %v1698_v63 = vld [vmem:[%s1995_s3 + $0x28] sm:$0xff]  }
 0x12c   : > { %v1444_v3 = vpop.f32.mrb[27].mxu0 }
 0x12d   : > { %v1445_v4 = vadd.f32 %v1444_v3, %v1443_v2 }
 0x12f   : > { %v511_v5 = vpack.c.bf16 %v1445_v4, %v1442_v1 }
 0x131   : > { %v1446_v6 = vpop.f32.mrb[28].mxu0  ;;  %v519_v7 = vmax.bf16 %v1709_v17, %v511_v5 }
 0x132   : > { %v1447_v8 = vpop.f32.mrb[29].mxu0 }
 0x133   : > { %v1448_v9 = vadd.f32 %v1447_v8, %v1446_v6  ;;  %v1449_v10 = vpop.f32.mrb[30].mxu0  ;;  %1544 = vmatprep.mubr.bf16.mxu1 %v519_v7 }
 0x134   : > { %v1450_v11 = vpop.f32.mrb[31].mxu0 }
 0x135   : > { %v1451_v12 = vadd.f32 %v1450_v11, %v1449_v10 }
 0x137   : > { %v512_v13 = vpack.c.bf16 %v1451_v12, %v1448_v9 }
 0x139   : > { %v520_v14 = vmax.bf16 %v1709_v17, %v512_v13 }
 0x13b   : > { %1545 = vmatmul.mubr.bf16.gmra.mrb[12].mxu1 %v520_v14 }
 0x1de   : > { %v1534_v24 = vpop.f32.mrb[0].mxu1 }
 0x1df   : > { %v619_v25 = vpop.f32.mrb[1].mxu1 }
 0x1e0   : > { %v1535_v26 = vpop.f32.mrb[2].mxu1 }
 0x1e1   : > { %v683_v27 = vpack.c.bf16 %v1535_v26, %v1534_v24  ;;  %v622_v28 = vpop.f32.mrb[3].mxu1 }
 0x1e2   : > { %v682_v29 = vpack.c.bf16 %v622_v28, %v619_v25 }
 0x1e3   : > { %v691_v31 = vmax.bf16 %v1709_v17, %v683_v27 }
 0x1e4   : > { %v690_v30 = vmax.bf16 %v1709_v17, %v682_v29 }
 0x1e6   : > { %1564 = vmatprep.mubr.bf16.mxu1 %v690_v30 }
 0x1e7   : > { %1565 = vmatmul.mubr.bf16.vlgmr.msra.gmra.mrb[16].mxu1 %v691_v31 }
 0x1e8   : > { %1613 = vmatpush3.bf16.msra.mxu1 %v1693_v58 }
 0x1e9   : > { %1614 = vmatprep.subr.bf16.mxu1 %v1694_v59 }
 0x1ec   : > { %1615 = vmatpush3.bf16.msra.mxu1 %v1694_v59 }
 0x1ed   : > { %1616 = vmatprep.subr.bf16.mxu1 %v1695_v60 }
 0x1ee   : > { %v1538_v32 = vpop.f32.mrb[4].mxu1 }
 0x1ef   : > { %v635_v33 = vpop.f32.mrb[5].mxu1 }
 0x1f0   : > { %v1539_v34 = vpop.f32.mrb[6].mxu1  ;;  %1617 = vmatpush3.bf16.msra.mxu1 %v1695_v60 }
 0x1f1   : > { %v685_v35 = vpack.c.bf16 %v1539_v34, %v1538_v32  ;;  %v638_v36 = vpop.f32.mrb[7].mxu1  ;;  %1618 = vmatprep.subr.bf16.mxu1 %v1696_v61  ;;  %v1700_v34 = vld [vmem:[%s1995_s3 + $0x38] sm:$0xff]  }
 0x1f2   : > { %v684_v37 = vpack.c.bf16 %v638_v36, %v635_v33  ;;  %v1699_v33 = vld [vmem:[%s1995_s3 + $0x30] sm:$0xff]  }
 0x1f3   : > { %v693_v39 = vmax.bf16 %v1709_v17, %v685_v35 }
 0x1f4   : > { %v692_v38 = vmax.bf16 %v1709_v17, %v684_v37  ;;  %1619 = vmatpush3.bf16.msra.mxu1 %v1696_v61 }
 0x1f5   : > { %1620 = vmatprep.subr.bf16.mxu1 %v1697_v62 }
 0x1f6   : > { %1568 = vmatprep.mubr.bf16.mxu1 %v692_v38 }
 0x1f7   : > { %1569 = vmatmul.mubr.bf16.gmra.mrb[20].mxu1 %v693_v39 }
 0x1f8   : > { %1621 = vmatpush3.bf16.msra.mxu1 %v1697_v62 }
 0x1f9   : > { %1622 = vmatprep.subr.bf16.mxu1 %v1698_v63 }
 0x1fc   : > { %1623 = vmatpush3.bf16.msra.mxu1 %v1698_v63 }
 0x1fd   : > { %1624 = vmatprep.subr.bf16.mxu1 %v1699_v33 }
 0x1fe   : > { %v1542_v40 = vpop.f32.mrb[8].mxu1 }
 0x1ff   : > { %v651_v41 = vpop.f32.mrb[9].mxu1 }
 0x200   : > { %v1543_v42 = vpop.f32.mrb[10].mxu1  ;;  %1625 = vmatpush3.bf16.msra.mxu1 %v1699_v33 }
 0x201   : > { %v687_v43 = vpack.c.bf16 %v1543_v42, %v1542_v40  ;;  %v654_v44 = vpop.f32.mrb[11].mxu1  ;;  %1626 = vmatprep.subr.bf16.mxu1 %v1700_v34 }
 0x202   : > { %v686_v45 = vpack.c.bf16 %v654_v44, %v651_v41 }
 0x203   : > { %v695_v47 = vmax.bf16 %v1709_v17, %v687_v43 }
 0x204   : > { %v694_v46 = vmax.bf16 %v1709_v17, %v686_v45  ;;  %1627 = vmatpush3.bf16.msra.mxu1 %v1700_v34 }
 0x206   : > { %1572 = vmatprep.mubr.bf16.mxu1 %v694_v46 }
 0x207   : > { %1573 = vmatmul.mubr.bf16.gmra.mrb[24].mxu1 %v695_v47 }
 0x20e   : > { %v1546_v48 = vpop.f32.mrb[12].mxu1 }
 0x20f   : > { %v667_v49 = vpop.f32.mrb[13].mxu1 }
 0x210   : > { %v1547_v50 = vpop.f32.mrb[14].mxu1 }
 0x211   : > { %v689_v51 = vpack.c.bf16 %v1547_v50, %v1546_v48  ;;  %v670_v52 = vpop.f32.mrb[15].mxu1 }
 0x212   : > { %v688_v53 = vpack.c.bf16 %v670_v52, %v667_v49 }
 0x213   : > { %v697_v55 = vmax.bf16 %v1709_v17, %v689_v51 }
 0x214   : > { %v696_v54 = vmax.bf16 %v1709_v17, %v688_v53 }
 0x216   : > { %1576 = vmatprep.mubr.bf16.mxu1 %v696_v54 }
 0x217   : > { %1577 = vmatmul.mubr.bf16.gmra.mrb[28].mxu1 %v697_v55 }
 0x2ba   : > { %v1566_v0 = vpop.f32.mrb[16].mxu1 }
 0x2bb   : > { %v797_v1 = vpop.f32.mrb[17].mxu1 }
 0x2bc   : > { %v1567_v2 = vpop.f32.mrb[18].mxu1 }
 0x2bd   : > { %v861_v3 = vpack.c.bf16 %v1567_v2, %v1566_v0  ;;  %v800_v4 = vpop.f32.mrb[19].mxu1 }
 0x2be   : > { %v860_v5 = vpack.c.bf16 %v800_v4, %v797_v1 }
 0x2bf   : > { %v869_v7 = vmax.bf16 %v1709_v17, %v861_v3  ;;  %v1376_v3 = vld [vmem:[%s1996_s4] ss:$0 sm:$0xff] }
 0x2c0   : > { %v868_v6 = vmax.bf16 %v1709_v17, %v860_v5 }
 0x2c2   : > { %1596 = vmatprep.mubr.bf16.mxu0 %v868_v6 }
 0x2c3   : > { %1597 = vmatmul.mubr.bf16.vlgmr.msra.gmra.mrb[32].mxu0 %v869_v7 }
 0x2ca   : > { %v1570_v8 = vpop.f32.mrb[20].mxu1 }
 0x2cb   : > { %v813_v9 = vpop.f32.mrb[21].mxu1 }
 0x2cc   : > { %v1571_v10 = vpop.f32.mrb[22].mxu1 }
 0x2cd   : > { %v863_v11 = vpack.c.bf16 %v1571_v10, %v1570_v8  ;;  %v816_v12 = vpop.f32.mrb[23].mxu1 }
 0x2ce   : > { %v862_v13 = vpack.c.bf16 %v816_v12, %v813_v9 }
 0x2cf   : > { %v871_v15 = vmax.bf16 %v1709_v17, %v863_v11 }
 0x2d0   : > { %v870_v14 = vmax.bf16 %v1709_v17, %v862_v13 }
 0x2d2   : > { %1600 = vmatprep.mubr.bf16.mxu0 %v870_v14 }
 0x2d3   : > { %1601 = vmatmul.mubr.bf16.gmra.mrb[36].mxu0 %v871_v15 }
 0x2da   : > { %v1574_v16 = vpop.f32.mrb[24].mxu1 }
 0x2db   : > { %v829_v18 = vpop.f32.mrb[25].mxu1 }
 0x2dc   : > { %v1575_v19 = vpop.f32.mrb[26].mxu1 }
 0x2dd   : > { %v865_v20 = vpack.c.bf16 %v1575_v19, %v1574_v16  ;;  %v832_v21 = vpop.f32.mrb[27].mxu1 }
 0x2de   : > { %v864_v22 = vpack.c.bf16 %v832_v21, %v829_v18 }
 0x2df   : > { %v873_v24 = vmax.bf16 %v1709_v17, %v865_v20 }
 0x2e0   : > { %v872_v23 = vmax.bf16 %v1709_v17, %v864_v22 }
 0x2e2   : > { %1604 = vmatprep.mubr.bf16.mxu0 %v872_v23 }
 0x2e3   : > { %1605 = vmatmul.mubr.bf16.gmra.mrb[40].mxu0 %v873_v24 }
 0x2ea   : > { %v1578_v25 = vpop.f32.mrb[28].mxu1 }
 0x2eb   : > { %v845_v26 = vpop.f32.mrb[29].mxu1 }
 0x2ec   : > { %v1579_v27 = vpop.f32.mrb[30].mxu1 }
 0x2ed   : > { %v867_v28 = vpack.c.bf16 %v1579_v27, %v1578_v25  ;;  %v848_v29 = vpop.f32.mrb[31].mxu1 }
 0x2ee   : > { %v866_v30 = vpack.c.bf16 %v848_v29, %v845_v26 }
 0x2ef   : > { %v875_v32 = vmax.bf16 %v1709_v17, %v867_v28 }
 0x2f0   : > { %v874_v31 = vmax.bf16 %v1709_v17, %v866_v30 }
 0x2f2   : > { %1608 = vmatprep.mubr.bf16.mxu0 %v874_v31 }
 0x2f3   : > { %1609 = vmatmul.mubr.bf16.gmra.mrb[44].mxu0 %v875_v32 }
 0x396   : > { %v1598_v35 = vpop.f32.mrb[32].mxu0 }
 0x397   : > { %v975_v36 = vpop.f32.mrb[33].mxu0 }
 0x398   : > { %v1599_v37 = vpop.f32.mrb[34].mxu0 }
 0x399   : > { %v1039_v38 = vpack.c.bf16 %v1599_v37, %v1598_v35  ;;  %v978_v39 = vpop.f32.mrb[35].mxu0 }
 0x39a   : > { %v1038_v40 = vpack.c.bf16 %v978_v39, %v975_v36 }
 0x39b   : > { %v1047_v42 = vmax.bf16 %v1709_v17, %v1039_v38 }
 0x39c   : > { %v1046_v41 = vmax.bf16 %v1709_v17, %v1038_v40 }
 0x39e   : > { %1628 = vmatprep.mubr.bf16.mxu1 %v1046_v41 }
 0x39f   : > { %1629 = vmatmul.mubr.bf16.vlgmr.msra.gmra.mrb[32].mxu1 %v1047_v42 }
 0x3a6   : > { %v1602_v43 = vpop.f32.mrb[36].mxu0 }
 0x3a7   : > { %v991_v44 = vpop.f32.mrb[37].mxu0 }
 0x3a8   : > { %v1603_v45 = vpop.f32.mrb[38].mxu0 }
 0x3a9   : > { %v1041_v46 = vpack.c.bf16 %v1603_v45, %v1602_v43  ;;  %v994_v47 = vpop.f32.mrb[39].mxu0 }
 0x3aa   : > { %v1040_v48 = vpack.c.bf16 %v994_v47, %v991_v44 }
 0x3ab   : > { %v1049_v50 = vmax.bf16 %v1709_v17, %v1041_v46 }
 0x3ac   : > { %v1048_v49 = vmax.bf16 %v1709_v17, %v1040_v48 }
 0x3ae   : > { %1632 = vmatprep.mubr.bf16.mxu1 %v1048_v49 }
 0x3af   : > { %1633 = vmatmul.mubr.bf16.gmra.mrb[36].mxu1 %v1049_v50 }
 0x3b6   : > { %v1606_v51 = vpop.f32.mrb[40].mxu0 }
 0x3b7   : > { %v1007_v52 = vpop.f32.mrb[41].mxu0 }
 0x3b8   : > { %v1607_v53 = vpop.f32.mrb[42].mxu0 }
 0x3b9   : > { %v1043_v54 = vpack.c.bf16 %v1607_v53, %v1606_v51  ;;  %v1010_v55 = vpop.f32.mrb[43].mxu0 }
 0x3ba   : > { %v1042_v56 = vpack.c.bf16 %v1010_v55, %v1007_v52 }
 0x3bb   : > { %v1051_v58 = vmax.bf16 %v1709_v17, %v1043_v54 }
 0x3bc   : > { %v1050_v57 = vmax.bf16 %v1709_v17, %v1042_v56 }
 0x3be   : > { %1636 = vmatprep.mubr.bf16.mxu1 %v1050_v57 }
 0x3bf   : > { %1637 = vmatmul.mubr.bf16.gmra.mrb[40].mxu1 %v1051_v58 }
 0x3c6   : > { %v1610_v59 = vpop.f32.mrb[44].mxu0 }
 0x3c7   : > { %v1023_v60 = vpop.f32.mrb[45].mxu0 }
 0x3c8   : > { %v1611_v61 = vpop.f32.mrb[46].mxu0 }
 0x3c9   : > { %v1045_v62 = vpack.c.bf16 %v1611_v61, %v1610_v59  ;;  %v1026_v63 = vpop.f32.mrb[47].mxu0 }
 0x3ca   : > { %v1044_v0 = vpack.c.bf16 %v1026_v63, %v1023_v60 }
 0x3cb   : > { %v1053_v2 = vmax.bf16 %v1709_v17, %v1045_v62 }
 0x3cc   : > { %v1052_v1 = vmax.bf16 %v1709_v17, %v1044_v0 }
 0x3ce   : > { %1640 = vmatprep.mubr.bf16.mxu1 %v1052_v1 }
 0x3cf   : > { %1641 = vmatmul.mubr.bf16.gmra.mrb[44].mxu1 %v1053_v2 }
 0x472   : > { %v1630_v4 = vpop.f32.mrb[32].mxu1 }
 0x473   : > { %v1168_v5 = vadd.f32 %v1630_v4, %v1376_v3  ;;  %v1159_v17 = vpop.f32.mrb[33].mxu1 }
 0x474   : > { %v1160_v6 = vadd.f32 %v1376_v3, %v1159_v17  ;;  %v1631_v7 = vpop.f32.mrb[34].mxu1 }
 0x475   : > { %1224 = vst [vmem:[%s1971_s9 + $0x10] sm:$0xff] %v1168_v5  ;;  %v1171_v8 = vadd.f32 %v1631_v7, %v1376_v3  ;;  %v1162_v9 = vpop.f32.mrb[35].mxu1 }
 0x476   : > { %1222 = vst [vmem:[%s1971_s9] sm:$0xff] %v1160_v6  ;;  %v1163_v10 = vadd.f32 %v1376_v3, %v1162_v9 }
 0x477   : > { %1225 = vst [vmem:[%s1971_s9 + $0x18] sm:$0xff] %v1171_v8 }
 0x478   : > { %1223 = vst [vmem:[%s1971_s9 + $0x8] sm:$0xff] %v1163_v10 }
 0x482   : > { %v1634_v11 = vpop.f32.mrb[36].mxu1 }
 0x483   : > { %v1184_v12 = vadd.f32 %v1634_v11, %v1376_v3  ;;  %v1175_v13 = vpop.f32.mrb[37].mxu1 }
 0x484   : > { %v1176_v14 = vadd.f32 %v1376_v3, %v1175_v13  ;;  %v1635_v15 = vpop.f32.mrb[38].mxu1 }
 0x485   : > { %1228 = vst [vmem:[%s1971_s9 + $0x30] sm:$0xff] %v1184_v12  ;;  %v1187_v16 = vadd.f32 %v1635_v15, %v1376_v3  ;;  %v1178_v18 = vpop.f32.mrb[39].mxu1 }
 0x486   : > { %1226 = vst [vmem:[%s1971_s9 + $0x20] sm:$0xff] %v1176_v14  ;;  %v1179_v19 = vadd.f32 %v1376_v3, %v1178_v18 }
 0x487   : > { %1229 = vst [vmem:[%s1971_s9 + $0x38] sm:$0xff] %v1187_v16 }
 0x488   : > { %1227 = vst [vmem:[%s1971_s9 + $0x28] sm:$0xff] %v1179_v19 }
 0x492   : > { %v1638_v20 = vpop.f32.mrb[40].mxu1 }
 0x493   : > { %v1200_v21 = vadd.f32 %v1638_v20, %v1376_v3  ;;  %v1191_v22 = vpop.f32.mrb[41].mxu1 }
 0x494   : > { %v1192_v23 = vadd.f32 %v1376_v3, %v1191_v22  ;;  %v1639_v24 = vpop.f32.mrb[42].mxu1 }
 0x495   : > { %1232 = vst [vmem:[%s1971_s9 + $0x50] sm:$0xff] %v1200_v21  ;;  %v1203_v25 = vadd.f32 %v1639_v24, %v1376_v3  ;;  %v1194_v26 = vpop.f32.mrb[43].mxu1 }
 0x496   : > { %1230 = vst [vmem:[%s1971_s9 + $0x40] sm:$0xff] %v1192_v23  ;;  %v1195_v27 = vadd.f32 %v1376_v3, %v1194_v26 }
 0x497   : > { %1233 = vst [vmem:[%s1971_s9 + $0x58] sm:$0xff] %v1203_v25 }
 0x498   : > { %1231 = vst [vmem:[%s1971_s9 + $0x48] sm:$0xff] %v1195_v27 }
 0x4a2   : > { %v1642_v28 = vpop.f32.mrb[44].mxu1 }
 0x4a3   : > { %v1216_v29 = vadd.f32 %v1642_v28, %v1376_v3  ;;  %v1207_v30 = vpop.f32.mrb[45].mxu1 }
 0x4a4   : > { %v1208_v31 = vadd.f32 %v1376_v3, %v1207_v30  ;;  %v1643_v32 = vpop.f32.mrb[46].mxu1 }
 0x4a5   : > { %1236 = vst [vmem:[%s1971_s9 + $0x70] sm:$0xff] %v1216_v29  ;;  %v1219_v33 = vadd.f32 %v1643_v32, %v1376_v3  ;;  %v1210_v34 = vpop.f32.mrb[47].mxu1 }
 0x4a6   : > { %1234 = vst [vmem:[%s1971_s9 + $0x60] sm:$0xff] %v1208_v31  ;;  %v1211_v35 = vadd.f32 %v1376_v3, %v1210_v34 }
 0x4a7   : > { %1237 = vst [vmem:[%s1971_s9 + $0x78] sm:$0xff] %v1219_v33 }
 0x4a8   : > { %1235 = vst [vmem:[%s1971_s9 + $0x68] sm:$0xff] %v1211_v35 }
 0x4a9 PF: > { %s15_s18 = sadd.s32 1, %s1707_s18  }
 0x4aa   : > { %p12_p4 = scmp.ge.s32.totalorder %s15_s18, 4  }
 0x4ac   :  { %14 = sbr.rel (!%p12_p4) target bundleno = 1 (0x1), region = 72 }

</bundles_post_ra>
